<compile_context>
chip_gen: v6e
topology: v6e:2x2x1
jax: 0.10.0
libtpu: 0.0.40
codegen_flags: <defaults>
</compile_context>

<pallas_src>
import math
import functools

import jax
import jax.numpy as jnp
from jax import lax  # noqa: F401
from jax.experimental import pallas as pl
from jax.experimental.pallas import tpu as pltpu  # noqa: F401  (TPU backend)

LANE = 128  # vreg lane width


def _full_spec(shape):
    # whole-array block, empty grid
    return pl.BlockSpec(shape, lambda: (0,) * len(shape))


def _gcn_fused_kernel(x_ref, adj_ref, w1_ref, b1_ref, w2_ref, b2_ref, o_ref,
                      *, mxu_dtype):
    adj = adj_ref[...]  # already mxu_dtype (cast in the wrapper)

    # ---------- layer 1: h = relu(adj @ (x @ W1) + b1) ----------
    # project first ("reduce width first") so the NxN matmul runs on [N, NHID]
    s1 = jnp.dot(x_ref[...], w1_ref[...], preferred_element_type=jnp.float32)
    h = jnp.dot(adj, s1.astype(mxu_dtype),
                preferred_element_type=jnp.float32) + b1_ref[...]
    h = jnp.maximum(h, 0.0)  # f32 epilogue on VPU
    # TODO(synk): F.dropout is only active in training mode; eval-mode forward
    # (dropout == identity) is implemented here.

    # ---------- layer 2: z = (adj @ h) @ W2p + b2p ----------
    # Re-associated so the N x N matmul uses the nhid-wide h, not the
    # ncp(=128)-wide padded class projection.
    t = jnp.dot(adj, h.astype(mxu_dtype), preferred_element_type=jnp.float32)
    z = jnp.dot(t.astype(mxu_dtype), w2_ref[...],
                preferred_element_type=jnp.float32) + b2_ref[...]

    # ---------- log_softmax (padded columns carry bias -1e30, W2p cols are 0,
    # so exp underflows to exactly 0 -> no explicit mask needed) ----------
    m = jnp.max(z, axis=1, keepdims=True)
    lse = m + jnp.log(jnp.sum(jnp.exp(z - m), axis=1, keepdims=True))
    # padded columns hold junk (z - lse); they are sliced away in the wrapper.
    o_ref[...] = (z - lse).astype(o_ref.dtype)


def preprocess_params(params, *, mxu_dtype=jnp.bfloat16):
    """One-time parameter prep: pad class dim to a lane multiple, cast weights."""
    w1, b1, w2, b2 = params
    nfeat, nhid = w1.shape
    nclass = w2.shape[1]
    ncp = ((nclass + LANE - 1) // LANE) * LANE  # lane-dense padded class width

    # padded W2 columns are exactly zero; padded bias columns are -1e30 so the
    # padded logits vanish in the softmax without an in-kernel mask.
    w2p = jnp.zeros((nhid, ncp), jnp.float32).at[:, :nclass].set(w2)
    b2p = jnp.full((1, ncp), -1e30, jnp.float32).at[0, :nclass].set(b2)
    b1r = b1.reshape(1, nhid).astype(jnp.float32)

    return {
        "w1": w1.astype(mxu_dtype),
        "b1": b1r,                      # biases / epilogue stay f32
        "w2": w2p.astype(mxu_dtype),
        "b2": b2p,
        "nclass": nclass,
        "ncp": ncp,
    }


@functools.partial(jax.jit, static_argnames=("nclass", "ncp", "mxu_dtype"))
def _gcn_forward_impl(x, adj, w1, b1, w2, b2, *, nclass, ncp, mxu_dtype):
    n, nfeat = x.shape
    nhid = w1.shape[1]

    # cast the per-call operands (adj is the big one: N^2) to the MXU dtype in
    # the wrapper -> half the HBM->VMEM DMA bytes vs. f32.
    xb = x.astype(mxu_dtype)
    adjb = adj.astype(mxu_dtype)

    ib = jnp.dtype(mxu_dtype).itemsize
    flops = (2 * n * nfeat * nhid        # x @ W1
             + 2 * n * n * nhid          # adj @ s1
             + 2 * n * n * nhid          # adj @ h
             + 2 * n * nhid * ncp)       # t @ W2p
    bytes_accessed = (ib * (xb.size + adjb.size + w1.size + w2.size)
                      + 4 * (b1.size + b2.size + n * ncp))
    cost = pl.CostEstimate(flops=flops,
                           transcendentals=n * (nclass + 1),
                           bytes_accessed=bytes_accessed)

    out_padded = pl.pallas_call(
        functools.partial(_gcn_fused_kernel, mxu_dtype=mxu_dtype),
        out_shape=jax.ShapeDtypeStruct((n, ncp), jnp.float32),
        in_specs=[
            _full_spec(xb.shape),
            _full_spec(adjb.shape),
            _full_spec(w1.shape),
            _full_spec(b1.shape),
            _full_spec(w2.shape),
            _full_spec(b2.shape),
        ],
        out_specs=_full_spec((n, ncp)),
        cost_estimate=cost,
    )(xb, adjb, w1, b1, w2, b2)

    return out_padded[:, :nclass]


def gcn_forward(x, adj, prep, *, mxu_dtype=jnp.bfloat16):
    """Fused 2-layer GCN forward. Returns [N, nclass] log-probabilities."""
    return _gcn_forward_impl(x, adj, prep["w1"], prep["b1"], prep["w2"],
                             prep["b2"], nclass=prep["nclass"],
                             ncp=prep["ncp"], mxu_dtype=mxu_dtype)


def init_gcn_params(key, nfeat, nhid, nclass):
    # Matches GraphConvolution.reset_parameters: uniform(-stdv, stdv),
    # stdv = 1 / sqrt(out_features)
    k1, k2, k3, k4 = jax.random.split(key, 4)
    stdv1 = 1.0 / math.sqrt(nhid)
    stdv2 = 1.0 / math.sqrt(nclass)
    w1 = jax.random.uniform(k1, (nfeat, nhid), jnp.float32, -stdv1, stdv1)
    b1 = jax.random.uniform(k2, (nhid,), jnp.float32, -stdv1, stdv1)
    w2 = jax.random.uniform(k3, (nhid, nclass), jnp.float32, -stdv2, stdv2)
    b2 = jax.random.uniform(k4, (nclass,), jnp.float32, -stdv2, stdv2)
    return (w1, b1, w2, b2)


def _gcn_reference(x, adj, params):
    # pure-JAX f32 reference (eval-mode PyTorch semantics)
    w1, b1, w2, b2 = params
    h = jnp.maximum(adj @ (x @ w1) + b1, 0.0)
    z = adj @ (h @ w2) + b2
    return jax.nn.log_softmax(z, axis=1)


if __name__ == "__main__":
    key = jax.random.PRNGKey(0)
    kx, ka, kp = jax.random.split(key, 3)

    N, NFEAT, NHID, NCLASS = 64, 32, 32, 8

    # node features
    x = jax.random.normal(kx, (N, NFEAT), jnp.float32)

    # symmetric normalized adjacency (dense stand-in for the sparse adj)
    a = (jax.random.uniform(ka, (N, N)) < 0.1).astype(jnp.float32)
    a = jnp.maximum(a, a.T) + jnp.eye(N, dtype=jnp.float32)
    deg = jnp.sum(a, axis=1)
    dinv = 1.0 / jnp.sqrt(deg)
    adj = a * dinv[:, None] * dinv[None, :]

    params = init_gcn_params(kp, NFEAT, NHID, NCLASS)
    prep = preprocess_params(params)   # one-time: pad/cast weights

    out = gcn_forward(x, adj, prep)
    jax.block_until_ready(out)
    assert out.shape == (N, NCLASS)

    # sanity 1: rows of log_softmax must exp-sum to 1 (exact regardless of
    # bf16 MXU inputs, since the softmax epilogue is f32)
    row_sums = jnp.sum(jnp.exp(out), axis=1)
    assert bool(jnp.all(jnp.abs(row_sums - 1.0) < 1e-4))

    # sanity 2: close to pure-f32 reference (loose tol for bf16 MXU inputs)
    ref = _gcn_reference(x, adj, params)
    assert bool(jnp.max(jnp.abs(out - ref)) < 0.1)

    print("KERNEL_OK")
</pallas_src>

<mosaic_0001>
module attributes {stable_mosaic.version = 11 : i64} {
  func.func @_gcn_fused_kernel(%arg0: memref<64x32xbf16, #tpu.memory_space<vmem>>, %arg1: memref<64x64xbf16, #tpu.memory_space<vmem>>, %arg2: memref<32x32xbf16, #tpu.memory_space<vmem>>, %arg3: memref<1x32xf32, #tpu.memory_space<vmem>>, %arg4: memref<32x128xbf16, #tpu.memory_space<vmem>>, %arg5: memref<1x128xf32, #tpu.memory_space<vmem>>, %arg6: memref<64x128xf32, #tpu.memory_space<vmem>>) attributes {dimension_semantics = [], scalar_prefetch = 0 : i64, scratch_operands = 0 : i64, tpu.core_type = #tpu.core_type<tc>} {
    %c0 = arith.constant 0 : index
    %c0_0 = arith.constant 0 : index
    %0 = vector.load %arg1[%c0, %c0_0] : memref<64x64xbf16, #tpu.memory_space<vmem>>, vector<64x64xbf16>
    %c0_1 = arith.constant 0 : index
    %c0_2 = arith.constant 0 : index
    %1 = vector.load %arg0[%c0_1, %c0_2] : memref<64x32xbf16, #tpu.memory_space<vmem>>, vector<64x32xbf16>
    %c0_3 = arith.constant 0 : index
    %c0_4 = arith.constant 0 : index
    %2 = vector.load %arg2[%c0_3, %c0_4] : memref<32x32xbf16, #tpu.memory_space<vmem>>, vector<32x32xbf16>
    %cst = arith.constant dense<0.000000e+00> : vector<64x32xf32>
    %3 = tpu.matmul %1, %2, %cst {dimension_numbers = #tpu.dot_dimension_numbers<[1], [0], [0], [1], [0, 0, 1, 1], [], []>} : vector<64x32xbf16>, vector<32x32xbf16>, vector<64x32xf32> -> vector<64x32xf32>
    %4 = arith.truncf %3 : vector<64x32xf32> to vector<64x32xbf16>
    %cst_5 = arith.constant dense<0.000000e+00> : vector<64x32xf32>
    %5 = tpu.matmul %0, %4, %cst_5 {dimension_numbers = #tpu.dot_dimension_numbers<[1], [0], [0], [1], [0, 0, 1, 1], [], []>} : vector<64x64xbf16>, vector<64x32xbf16>, vector<64x32xf32> -> vector<64x32xf32>
    %c0_6 = arith.constant 0 : index
    %c0_7 = arith.constant 0 : index
    %6 = vector.load %arg3[%c0_6, %c0_7] : memref<1x32xf32, #tpu.memory_space<vmem>>, vector<1x32xf32>
    %7 = vector.broadcast %6 : vector<1x32xf32> to vector<64x32xf32>
    %8 = arith.addf %5, %7 : vector<64x32xf32>
    %cst_8 = arith.constant 0.000000e+00 : f32
    %9 = vector.broadcast %cst_8 : f32 to vector<64x32xf32>
    %10 = arith.maximumf %8, %9 : vector<64x32xf32>
    %11 = arith.truncf %10 : vector<64x32xf32> to vector<64x32xbf16>
    %cst_9 = arith.constant dense<0.000000e+00> : vector<64x32xf32>
    %12 = tpu.matmul %0, %11, %cst_9 {dimension_numbers = #tpu.dot_dimension_numbers<[1], [0], [0], [1], [0, 0, 1, 1], [], []>} : vector<64x64xbf16>, vector<64x32xbf16>, vector<64x32xf32> -> vector<64x32xf32>
    %13 = arith.truncf %12 : vector<64x32xf32> to vector<64x32xbf16>
    %c0_10 = arith.constant 0 : index
    %c0_11 = arith.constant 0 : index
    %14 = vector.load %arg4[%c0_10, %c0_11] : memref<32x128xbf16, #tpu.memory_space<vmem>>, vector<32x128xbf16>
    %cst_12 = arith.constant dense<0.000000e+00> : vector<64x128xf32>
    %15 = tpu.matmul %13, %14, %cst_12 {dimension_numbers = #tpu.dot_dimension_numbers<[1], [0], [0], [1], [0, 0, 1, 1], [], []>} : vector<64x32xbf16>, vector<32x128xbf16>, vector<64x128xf32> -> vector<64x128xf32>
    %c0_13 = arith.constant 0 : index
    %c0_14 = arith.constant 0 : index
    %16 = vector.load %arg5[%c0_13, %c0_14] : memref<1x128xf32, #tpu.memory_space<vmem>>, vector<1x128xf32>
    %17 = vector.broadcast %16 : vector<1x128xf32> to vector<64x128xf32>
    %18 = arith.addf %15, %17 : vector<64x128xf32>
    %cst_15 = arith.constant dense<0xFF800000> : vector<64xf32>
    %19 = vector.multi_reduction <maximumf>, %18, %cst_15 [1] : vector<64x128xf32> to vector<64xf32>
    %20 = vector.shape_cast %19 : vector<64xf32> to vector<64x1xf32>
    %21 = vector.broadcast %20 : vector<64x1xf32> to vector<64x128xf32>
    %22 = arith.subf %18, %21 : vector<64x128xf32>
    %23 = math.exp %22 : vector<64x128xf32>
    %cst_16 = arith.constant dense<0.000000e+00> : vector<64xf32>
    %24 = vector.multi_reduction <add>, %23, %cst_16 [1] : vector<64x128xf32> to vector<64xf32>
    %25 = vector.shape_cast %24 : vector<64xf32> to vector<64x1xf32>
    %26 = math.log %25 : vector<64x1xf32>
    %27 = arith.addf %20, %26 : vector<64x1xf32>
    %28 = vector.broadcast %27 : vector<64x1xf32> to vector<64x128xf32>
    %29 = arith.subf %18, %28 : vector<64x128xf32>
    %c0_17 = arith.constant 0 : index
    %c0_18 = arith.constant 0 : index
    %30 = vector.load %arg6[%c0_17, %c0_18] : memref<64x128xf32, #tpu.memory_space<vmem>>, vector<64x128xf32>
    tpu.vector_store %arg6[%c0_17, %c0_18], %29 {strides = array<i32>} : memref<64x128xf32, #tpu.memory_space<vmem>>, vector<64x128xf32>,
    return
  }
}

</mosaic_0001>

<bundles_post_ra>
// kernel: _gcn_forward_impl.1
= control target key start
LH: loop header
LB: loop body
LE: loop exit
PB: predicated region body
PF: predicated region fallthrough
CT: control target
= control target key end

     0   :  { %vm76_vm0 = vcmask 261120   ;;  %vm185_vm1 = vcmask 523264   ;;  %s891_s2 = inlined_call_operand.vmem [shape: bf16[32,32], index: 2, kind: input, shape index: {}]   ;;  %s892_s0 = inlined_call_operand.vmem [shape: bf16[64,32], index: 0, kind: input, shape index: {}]   ;;  %s893_s1 = inlined_call_operand.vmem [shape: bf16[64,64], index: 1, kind: input, shape index: {}]   ;;  %s894_s4 = inlined_call_operand.vmem [shape: bf16[32,128], index: 4, kind: input, shape index: {}]   ;;  %s895_s3 = inlined_call_operand.vmem [shape: f32[1,32], index: 3, kind: input, shape index: {}]   ;;  %s896_s5 = inlined_call_operand.vmem [shape: f32[1,128], index: 5, kind: input, shape index: {}]   ;;  %s897_s6 = inlined_call_operand.vmem [shape: f32[64,128], index: 6, kind: output, shape index: {}]  }
   0x1   :  { %v658_v0 = vld [vmem:[%s891_s2 + $0x8] sm:$0xff]   ;;  %v659_v1 = vld [vmem:[%s891_s2] sm:$0xff]   ;;  %v662_v4 = vld [vmem:[%s892_s0 + $0x10] sm:$0xff]  }
   0x2   :  { %602 = vmatprep.subr.bf16.mxu0 %v658_v0  ;;  %v660_v2 = vld [vmem:[%s892_s0] sm:$0xff]   ;;  %v661_v3 = vld [vmem:[%s892_s0 + $0x8] sm:$0xff]   ;;  %v663_v5 = vld [vmem:[%s892_s0 + $0x18] sm:$0xff]  }
   0x3   :  { %603 = vmatpush3.bf16.msra.mxu0 %v658_v0  ;;  %606 = vmatprep.mubr.msk.bf16.mxu0 %vm76_vm0, %v660_v2  ;;  %v664_v6 = vld [vmem:[%s893_s1] sm:$0xff]   ;;  %v665_v19 = vld [vmem:[%s893_s1 + $0x8] sm:$0xff]   ;;  %v666_v20 = vld [vmem:[%s893_s1 + $0x10] sm:$0xff]  }
   0x4   :  { %604 = vmatprep.subr.bf16.mxu0 %v659_v1  ;;  %622 = vmatprep.mubr.msk.bf16.mxu1 %vm185_vm1, %v664_v6  ;;  %v667_v21 = vld [vmem:[%s893_s1 + $0x18] sm:$0xff]   ;;  %v668_v22 = vld [vmem:[%s894_s4 + $0x8] sm:$0xff]   ;;  %v554_v28 = vld [vmem:[%s895_s3] ss:$0 sm:$0xff] }
   0x5   :  { %v669_v52 = vld [vmem:[%s894_s4] sm:$0xff]  }
   0x7   :  { %605 = vmatpush3.bf16.msra.mxu0 %v659_v1  ;;  %v567_v1 = vld [vmem:[%s896_s5] ss:$0 sm:$0xff] }
   0xa   :  { %607 = vmatmul.mubr.msk.bf16.vlgmr.msra.gmra.mxu0 %vm76_vm0, %v661_v3 }
   0xb   :  { %610 = vmatprep.mubr.msk.bf16.mxu0 %vm76_vm0, %v662_v4 }
  0x12   :  { %611 = vmatmul.mubr.msk.bf16.gmra.mxu0 %vm76_vm0, %v663_v5 }
  0x13   :  { %638 = vmatprep.mubr.msk.bf16.mxu0 %vm185_vm1, %v664_v6 }
  0xca   :  { %v608_v7 = vpop.f32.mrf.mxu0 }
  0xcc   :  { %v123_v8 = vpop.f32.mrf.mxu0 }
  0xce   :  { %v609_v9 = vpop.f32.mrf.mxu0 }
  0xcf   :  { %v155_v17 = vpack.c.bf16 %v609_v9, %v608_v7 }
  0xd0   :  { %v126_v10 = vpop.f32.mrf.mxu0 }
  0xd1   :  { %v154_v18 = vpack.c.bf16 %v126_v10, %v123_v8 }
  0xd2   :  { %v612_v11 = vpop.f32.mrf.mxu0 }
  0xd4   :  { %v139_v12 = vpop.f32.mrf.mxu0 }
  0xd6   :  { %v613_v13 = vpop.f32.mrf.mxu0 }
  0xd7   :  { %v157_v14 = vpack.c.bf16 %v613_v13, %v612_v11 }
  0xd8   :  { %v142_v15 = vpop.f32.mrf.mxu0 }
  0xd9   :  { %v156_v16 = vpack.c.bf16 %v142_v15, %v139_v12  ;;  %614 = vmatprep.subr.bf16.mxu1 %v157_v14 }
  0xda   :  { %615 = vmatpush3.bf16.msra.mxu1 %v157_v14 }
  0xdb   :  { %616 = vmatprep.subr.bf16.mxu1 %v156_v16 }
  0xde   :  { %617 = vmatpush3.bf16.msra.mxu1 %v156_v16 }
  0xdf   :  { %618 = vmatprep.subr.bf16.mxu1 %v155_v17 }
  0xe2   :  { %619 = vmatpush3.bf16.msra.mxu1 %v155_v17 }
  0xe3   :  { %620 = vmatprep.subr.bf16.mxu1 %v154_v18 }
  0xe6   :  { %621 = vmatpush3.bf16.msra.mxu1 %v154_v18 }
  0xe7   :  { %646 = vmatprep.subr.bf16.mxu1 %v668_v22 }
  0xe9   :  { %623 = vmatmul.mubr.msk.bf16.vlgmr.msra.gmra.mxu1 %vm185_vm1, %v665_v19 }
  0xea   :  { %626 = vmatprep.mubr.msk.bf16.mxu1 %vm185_vm1, %v666_v20  ;;  %647 = vmatpush3.bf16.msra.mxu1 %v668_v22 }
  0xeb   :  { %648 = vmatprep.subr.bf16.mxu1 %v669_v52 }
  0xee   :  { %649 = vmatpush3.bf16.msra.mxu1 %v669_v52 }
  0xf1   :  { %627 = vmatmul.mubr.msk.bf16.gmra.mxu1 %vm185_vm1, %v667_v21 }
 0x1a9   :  { %v624_v23 = vpop.f32.mrf.mxu1 }
 0x1aa   :  { %v241_v39 = vadd.f32 %v624_v23, %v554_v28 }
 0x1ab   :  { %v232_v24 = vpop.f32.mrf.mxu1 }
 0x1ac   :  { %v265_v46 = vmax.f32 %v241_v39, 0.0  ;;  %v233_v47 = vadd.f32 %v554_v28, %v232_v24 }
 0x1ad   :  { %v625_v25 = vpop.f32.mrf.mxu1 }
 0x1ae   :  { %v244_v35 = vadd.f32 %v625_v25, %v554_v28  ;;  %v263_v50 = vmax.f32 %v233_v47, 0.0 }
 0x1af   :  { %v235_v26 = vpop.f32.mrf.mxu1 }
 0x1b0   :  { %v266_v43 = vmax.f32 %v244_v35, 0.0  ;;  %v236_v44 = vadd.f32 %v554_v28, %v235_v26 }
 0x1b1   :  { %v628_v27 = vpop.f32.mrf.mxu1 }
 0x1b2   :  { %v257_v30 = vadd.f32 %v628_v27, %v554_v28  ;;  %v272_v48 = vpack.c.bf16 %v266_v43, %v265_v46  ;;  %v264_v49 = vmax.f32 %v236_v44, 0.0 }
 0x1b3   :  { %v248_v29 = vpop.f32.mrf.mxu1 }
 0x1b4   :  { %v249_v32 = vadd.f32 %v554_v28, %v248_v29  ;;  %v269_v36 = vmax.f32 %v257_v30, 0.0  ;;  %v271_v51 = vpack.c.bf16 %v264_v49, %v263_v50 }
 0x1b5   :  { %v629_v31 = vpop.f32.mrf.mxu1 }
 0x1b6   :  { %v260_v33 = vadd.f32 %v629_v31, %v554_v28  ;;  %v267_v40 = vmax.f32 %v249_v32, 0.0 }
 0x1b7   :  { %v251_v34 = vpop.f32.mrf.mxu1 }
 0x1b8   :  { %v270_v37 = vmax.f32 %v260_v33, 0.0  ;;  %v252_v38 = vadd.f32 %v554_v28, %v251_v34 }
 0x1ba   :  { %v274_v41 = vpack.c.bf16 %v270_v37, %v269_v36  ;;  %v268_v42 = vmax.f32 %v252_v38, 0.0 }
 0x1bc   :  { %v273_v45 = vpack.c.bf16 %v268_v42, %v267_v40  ;;  %630 = vmatprep.subr.bf16.mxu0 %v274_v41 }
 0x1bd   :  { %631 = vmatpush3.bf16.msra.mxu0 %v274_v41 }
 0x1be   :  { %632 = vmatprep.subr.bf16.mxu0 %v273_v45 }
 0x1c1   :  { %633 = vmatpush3.bf16.msra.mxu0 %v273_v45 }
 0x1c2   :  { %634 = vmatprep.subr.bf16.mxu0 %v272_v48 }
 0x1c5   :  { %635 = vmatpush3.bf16.msra.mxu0 %v272_v48 }
 0x1c6   :  { %636 = vmatprep.subr.bf16.mxu0 %v271_v51 }
 0x1c9   :  { %637 = vmatpush3.bf16.msra.mxu0 %v271_v51 }
 0x1cc   :  { %639 = vmatmul.mubr.msk.bf16.vlgmr.msra.gmra.mxu0 %vm185_vm1, %v665_v19 }
 0x1cd   :  { %642 = vmatprep.mubr.msk.bf16.mxu0 %vm185_vm1, %v666_v20 }
 0x1d4   :  { %643 = vmatmul.mubr.msk.bf16.gmra.mxu0 %vm185_vm1, %v667_v21 }
 0x28c   :  { %v640_v53 = vpop.f32.mrf.mxu0 }
 0x28e   :  { %v309_v54 = vpop.f32.mrf.mxu0 }
 0x290   :  { %v641_v55 = vpop.f32.mrf.mxu0 }
 0x291   :  { %v341_v58 = vpack.c.bf16 %v641_v55, %v640_v53 }
 0x292   :  { %v312_v56 = vpop.f32.mrf.mxu0 }
 0x293   :  { %v340_v57 = vpack.c.bf16 %v312_v56, %v309_v54 }
 0x294   :  { %v644_v59 = vpop.f32.mrf.mxu0 }
 0x295   :  { %650 = vmatprep.mubr.msk.bf16.mxu1 %vm76_vm0, %v340_v57 }
 0x296   :  { %v325_v60 = vpop.f32.mrf.mxu0  ;;  %651 = vmatmul.mubr.msk.bf16.vlgmr.msra.gmra.mxu1 %vm76_vm0, %v341_v58 }
 0x298   :  { %v645_v61 = vpop.f32.mrf.mxu0 }
 0x299   :  { %v343_v0 = vpack.c.bf16 %v645_v61, %v644_v59 }
 0x29a   :  { %v328_v62 = vpop.f32.mrf.mxu0 }
 0x29b   :  { %v342_v63 = vpack.c.bf16 %v328_v62, %v325_v60 }
 0x29d   :  { %654 = vmatprep.mubr.msk.bf16.mxu1 %vm76_vm0, %v342_v63 }
 0x29e   :  { %655 = vmatmul.mubr.msk.bf16.gmra.mxu1 %vm76_vm0, %v343_v0 }
 0x356   :  { %v652_v2 = vpop.f32.mrf.mxu1 }
 0x357   :  { %v795_v3 = vadd.f32 %v652_v2, %v567_v1 }
 0x358   :  { %v413_v4 = vpop.f32.mrf.mxu1 }
 0x359   :  { %v797_v5 = vadd.f32 %v567_v1, %v413_v4  ;;  %448 = vmax.xlane.f32.xlu1 %v795_v3 }
 0x35a   :  { %v653_v6 = vpop.f32.mrf.mxu1 }
 0x35b   :  { %v800_v7 = vadd.f32 %v653_v6, %v567_v1  ;;  %444 = vmax.xlane.f32.xlu0 %v797_v5 }
 0x35c   :  { %v416_v8 = vpop.f32.mrf.mxu1 }
 0x35d   :  { %v803_v9 = vadd.f32 %v567_v1, %v416_v8  ;;  %450 = vmax.xlane.f32.xlu1 %v800_v7 }
 0x35e   :  { %v656_v10 = vpop.f32.mrf.mxu1 }
 0x35f   :  { %446 = vmax.xlane.f32.xlu0 %v803_v9  ;;  %v810_v15 = vadd.f32 %v656_v10, %v567_v1 }
 0x360   :  { %v429_v11 = vpop.f32.mrf.mxu1 }
 0x361   :  { %v807_v12 = vadd.f32 %v567_v1, %v429_v11 }
 0x362   :  { %v657_v13 = vpop.f32.mrf.mxu1 }
 0x363   :  { %452 = vmax.xlane.f32.xlu0 %v807_v12  ;;  %v816_v17 = vadd.f32 %v657_v13, %v567_v1 }
 0x364   :  { %v432_v14 = vpop.f32.mrf.mxu1 }
 0x365   :  { %v812_v16 = vadd.f32 %v567_v1, %v432_v14 }
 0x367   :  { %454 = vmax.xlane.f32.xlu1 %v812_v16  ;;  %456 = vmax.xlane.f32.xlu0 %v810_v15 }
 0x36b   :  { %458 = vmax.xlane.f32.xlu1 %v816_v17 }
 0x3e2   :  { %v819_v18 = vpop.xlane.xlu1 %448 }
 0x3e3   :  { %v462_v19 = vsub.f32 %v795_v3, %v819_v18 }
 0x3e4   :  { %v823_v20 = vpop.xlane.xlu0 %444 }
 0x3e5   :  { %v472_v21 = vmul.f32 1.442695, %v462_v19  ;;  %v460_v22 = vsub.f32 %v797_v5, %v823_v20 }
 0x3e6   :  { %v827_v23 = vpop.xlane.xlu1 %450 }
 0x3e7   :  { %670 = vpow2.f32 %v472_v21  ;;  %v468_v24 = vmul.f32 1.442695, %v460_v22  ;;  %v463_v25 = vsub.f32 %v800_v7, %v827_v23 }
 0x3e8   :  { %v831_v26 = vpop.xlane.xlu0 %446 }
 0x3e9   :  { %v474_v27 = vmul.f32 1.442695, %v463_v25  ;;  %v461_v28 = vsub.f32 %v803_v9, %v831_v26  ;;  %672 = vpow2.f32 %v468_v24 }
 0x3eb   :  { %674 = vpow2.f32 %v474_v27  ;;  %v470_v29 = vmul.f32 1.442695, %v461_v28 }
 0x3ec   :  { %v835_v30 = vpop.xlane.xlu0 %452 }
 0x3ed   :  { %v464_v31 = vsub.f32 %v807_v12, %v835_v30  ;;  %676 = vpow2.f32 %v470_v29 }
 0x3ef   :  { %v476_v32 = vmul.f32 1.442695, %v464_v31 }
 0x3f0   :  { %v839_v33 = vpop.xlane.xlu1 %454  ;;  %v841_v34 = vpop.xlane.xlu0 %456 }
 0x3f1   :  { %678 = vpow2.f32 %v476_v32  ;;  %v465_v35 = vsub.f32 %v812_v16, %v839_v33  ;;  %v466_v36 = vsub.f32 %v810_v15, %v841_v34 }
 0x3f3   :  { %v478_v37 = vmul.f32 1.442695, %v465_v35  ;;  %v480_v38 = vmul.f32 1.442695, %v466_v36 }
 0x3f4   :  { %v671_v39 = vpop.eup %670  ;;  %v847_v40 = vpop.xlane.xlu1 %458 }
 0x3f5   :  { %680 = vpow2.f32 %v478_v37  ;;  %v467_v41 = vsub.f32 %v816_v17, %v847_v40  ;;  %488 = vadd.xlane.f32.xlu0 %v671_v39 }
 0x3f6   :  { %682 = vpow2.f32 %v480_v38  ;;  %v673_v42 = vpop.eup %672 }
 0x3f7   :  { %v482_v43 = vmul.f32 1.442695, %v467_v41 }
 0x3f8   :  { %v675_v44 = vpop.eup %674 }
 0x3f9   :  { %684 = vpow2.f32 %v482_v43  ;;  %490 = vadd.xlane.f32.xlu1 %v675_v44  ;;  %484 = vadd.xlane.f32.xlu0 %v673_v42 }
 0x3fa   :  { %v677_v45 = vpop.eup %676 }
 0x3fd   :  { %486 = vadd.xlane.f32.xlu1 %v677_v45 }
 0x3fe   :  { %v679_v46 = vpop.eup %678 }
 0x3ff   :  { %492 = vadd.xlane.f32.xlu0 %v679_v46 }
 0x402   :  { %v681_v47 = vpop.eup %680 }
 0x403   :  { %v683_v48 = vpop.eup %682  ;;  %494 = vadd.xlane.f32.xlu1 %v681_v47 }
 0x404   :  { %496 = vadd.xlane.f32.xlu0 %v683_v48 }
 0x406   :  { %v685_v49 = vpop.eup %684 }
 0x407   :  { %498 = vadd.xlane.f32.xlu1 %v685_v49 }
 0x47e   :  { %v489_v50 = vpop.xlane.xlu0 %488 }
 0x47f   :  { %686 = vlog2.f32 %v489_v50 }
 0x482   :  { %v491_v51 = vpop.xlane.xlu1 %490  ;;  %v485_v52 = vpop.xlane.xlu0 %484 }
 0x483   :  { %688 = vlog2.f32 %v491_v51 }
 0x484   :  { %690 = vlog2.f32 %v485_v52 }
 0x486   :  { %v487_v53 = vpop.xlane.xlu1 %486 }
 0x487   :  { %692 = vlog2.f32 %v487_v53 }
 0x488   :  { %v493_v54 = vpop.xlane.xlu0 %492 }
 0x489   :  { %694 = vlog2.f32 %v493_v54 }
 0x48c   :  { %v687_v55 = vpop.eup %686  ;;  %v495_v56 = vpop.xlane.xlu1 %494 }
 0x48d   :  { %v505_v57 = vmul.f32 0.6931472, %v687_v55  ;;  %696 = vlog2.f32 %v495_v56  ;;  %v497_v58 = vpop.xlane.xlu0 %496 }
 0x48e   :  { %698 = vlog2.f32 %v497_v58 }
 0x48f   :  { %v518_v59 = vadd.f32 %v505_v57, %v819_v18 }
 0x490   :  { %v689_v60 = vpop.eup %688  ;;  %v499_v61 = vpop.xlane.xlu1 %498 }
 0x491   :  { %v691_v62 = vpop.eup %690  ;;  %v526_v63 = vsub.f32 %v795_v3, %v518_v59  ;;  %v507_v0 = vmul.f32 0.6931472, %v689_v60  ;;  %700 = vlog2.f32 %v499_v61 }
 0x492   :  { %v501_v1 = vmul.f32 0.6931472, %v691_v62 }
 0x493   :  { %534 = vst [vmem:[%s897_s6 + $0x10] sm:$0xff] %v526_v63  ;;  %v519_v2 = vadd.f32 %v507_v0, %v827_v23 }
 0x494   :  { %v693_v4 = vpop.eup %692  ;;  %v516_v6 = vadd.f32 %v501_v1, %v823_v20 }
 0x495   :  { %v527_v8 = vsub.f32 %v800_v7, %v519_v2  ;;  %v503_v10 = vmul.f32 0.6931472, %v693_v4 }
 0x496   :  { %v695_v11 = vpop.eup %694  ;;  %v524_v13 = vsub.f32 %v797_v5, %v516_v6 }
 0x497   :  { %535 = vst [vmem:[%s897_s6 + $0x18] sm:$0xff] %v527_v8  ;;  %v517_v3 = vadd.f32 %v503_v10, %v831_v26  ;;  %v509_v14 = vmul.f32 0.6931472, %v695_v11 }
 0x498   :  { %532 = vst [vmem:[%s897_s6] sm:$0xff] %v524_v13 }
 0x499   :  { %v525_v18 = vsub.f32 %v803_v9, %v517_v3  ;;  %v520_v19 = vadd.f32 %v509_v14, %v835_v30 }
 0x49a   :  { %v697_v7 = vpop.eup %696 }
 0x49b   :  { %v699_v20 = vpop.eup %698  ;;  %533 = vst [vmem:[%s897_s6 + $0x8] sm:$0xff] %v525_v18  ;;  %v528_v5 = vsub.f32 %v807_v12, %v520_v19  ;;  %v511_v21 = vmul.f32 0.6931472, %v697_v7 }
 0x49c   :  { %v513_v22 = vmul.f32 0.6931472, %v699_v20 }
 0x49d   :  { %536 = vst [vmem:[%s897_s6 + $0x20] sm:$0xff] %v528_v5  ;;  %v521_v23 = vadd.f32 %v511_v21, %v839_v33 }
 0x49e   :  { %v701_v24 = vpop.eup %700  ;;  %v522_v9 = vadd.f32 %v513_v22, %v841_v34 }
 0x49f   :  { %v529_v25 = vsub.f32 %v812_v16, %v521_v23  ;;  %v515_v26 = vmul.f32 0.6931472, %v701_v24 }
 0x4a0   :  { %v530_v27 = vsub.f32 %v810_v15, %v522_v9 }
 0x4a1   :  { %537 = vst [vmem:[%s897_s6 + $0x28] sm:$0xff] %v529_v25  ;;  %v523_v12 = vadd.f32 %v515_v26, %v847_v40 }
 0x4a2   :  { %538 = vst [vmem:[%s897_s6 + $0x30] sm:$0xff] %v530_v27 }
 0x4a3   :  { %v531_v28 = vsub.f32 %v816_v17, %v523_v12 }
 0x4a5   :  { %539 = vst [vmem:[%s897_s6 + $0x38] sm:$0xff] %v531_v28 }

</bundles_post_ra>
